<compile_context>
chip_gen: v7x
topology: tpu7x:2x2x1
jax: 0.10.0
libtpu: 0.0.40
codegen_flags: <defaults>
</compile_context>

<pallas_src>
import jax
import jax.numpy as jnp
from jax.experimental import pallas as pl
from jax.experimental.pallas import tpu as pltpu


_SQRT_HALF = 0.7071067811865476

# Abramowitz & Stegun 7.1.26 erf approximation (|err| < 1.5e-7): only needs
# exp / mul / add / where, all of which lower cleanly in Mosaic, while staying
# numerically equivalent to torch.nn.GELU()'s exact (erf) form.
# TODO(synk): switch to lax.erf directly once its Mosaic lowering is guaranteed.
_ERF_P = 0.3275911
_ERF_A1 = 0.254829592
_ERF_A2 = -0.284496736
_ERF_A3 = 1.421413741
_ERF_A4 = -1.453152027
_ERF_A5 = 1.061405429


def _erf(x):
    sign = jnp.where(x >= 0.0, 1.0, -1.0)
    a = jnp.abs(x)
    t = 1.0 / (1.0 + _ERF_P * a)
    poly = ((((_ERF_A5 * t + _ERF_A4) * t + _ERF_A3) * t + _ERF_A2) * t + _ERF_A1) * t
    return sign * (1.0 - poly * jnp.exp(-a * a))


def _gelu_exact(x):
    # Matches torch.nn.GELU() (exact erf form) to ~1e-7.
    return x * 0.5 * (1.0 + _erf(x * _SQRT_HALF))


def mlp_kernel(x_ref, w1_ref, b1_ref, w2_ref, b2_ref, o_ref):
    # fc1: (tm, d_in) @ (d_in, d_hid), f32 accumulation on the MXU.
    h = jnp.dot(x_ref[...], w1_ref[...], preferred_element_type=jnp.float32)
    h = h + b1_ref[...].astype(jnp.float32)
    h = _gelu_exact(h)
    # fc2: cast back to the weight dtype so bf16 inputs keep the bf16 MXU path.
    out = jnp.dot(h.astype(w2_ref.dtype), w2_ref[...],
                  preferred_element_type=jnp.float32)
    out = out + b2_ref[...].astype(jnp.float32)
    o_ref[...] = out.astype(o_ref.dtype)


def _round_up(x, m):
    return ((x + m - 1) // m) * m


def mlp_forward(x, params, *, tm=256):
    """Fused MLP forward: gelu(x @ w1 + b1) @ w2 + b2 (dropout p=0 omitted).

    x: (..., d_in). Weights are stored pre-transposed: w1 (d_in, d_hid),
    w2 (d_hid, d_out); biases are (1, d_hid) / (1, d_out).
    """
    w1, b1, w2, b2 = params
    d_in, d_hid = w1.shape
    d_hid2, d_out = w2.shape
    assert d_hid == d_hid2 and x.shape[-1] == d_in

    lead = x.shape[:-1]
    x2 = x.reshape(-1, d_in)
    m = x2.shape[0]

    # Token-tile size: a multiple of 8 sublanes, no bigger than the padded M.
    tm_eff = min(tm, _round_up(m, 8))
    m_pad = _round_up(m, tm_eff)
    if m_pad != m:
        x2 = jnp.pad(x2, ((0, m_pad - m), (0, 0)))
    grid = (m_pad // tm_eff,)

    itemsize = jnp.dtype(x.dtype).itemsize
    cost = pl.CostEstimate(
        flops=2 * m * d_hid * (d_in + d_out),
        transcendentals=m * d_hid,
        bytes_accessed=(m * (d_in + d_out) + w1.size + w2.size
                        + b1.size + b2.size) * itemsize,
    )

    out = pl.pallas_call(
        mlp_kernel,
        out_shape=jax.ShapeDtypeStruct((m_pad, d_out), x.dtype),
        grid=grid,
        in_specs=[
            pl.BlockSpec((tm_eff, d_in), lambda i: (i, 0)),
            pl.BlockSpec((d_in, d_hid), lambda i: (0, 0)),   # resident weights
            pl.BlockSpec((1, d_hid), lambda i: (0, 0)),
            pl.BlockSpec((d_hid, d_out), lambda i: (0, 0)),
            pl.BlockSpec((1, d_out), lambda i: (0, 0)),
        ],
        out_specs=pl.BlockSpec((tm_eff, d_out), lambda i: (i, 0)),
        compiler_params=pltpu.CompilerParams(
            dimension_semantics=("parallel",),
            vmem_limit_bytes=64 * 1024 * 1024,
        ),
        cost_estimate=cost,
    )(x2, w1, b1, w2, b2)

    if m_pad != m:
        out = out[:m]
    return out.reshape(*lead, d_out)


def init_params(key, in_features, hidden_features=None, out_features=None,
                dtype=jnp.float32):
    hidden_features = hidden_features or in_features
    out_features = out_features or in_features
    k1, k2, k3, k4 = jax.random.split(key, 4)
    w1 = jax.random.normal(k1, (in_features, hidden_features), dtype) * 0.05
    b1 = jax.random.normal(k2, (1, hidden_features), dtype) * 0.05
    w2 = jax.random.normal(k3, (hidden_features, out_features), dtype) * 0.05
    b2 = jax.random.normal(k4, (1, out_features), dtype) * 0.05
    return (w1, b1, w2, b2)


def mlp_ref(x, params):
    # Pure-JAX reference mirroring the PyTorch forward (exact GELU, drop=0).
    w1, b1, w2, b2 = params
    h = jax.nn.gelu(jnp.dot(x, w1) + b1[0], approximate=False)
    return jnp.dot(h, w2) + b2[0]


if __name__ == "__main__":
    key = jax.random.PRNGKey(0)
    kx, kp = jax.random.split(key)
    B, S, D_IN, D_HID = 2, 8, 32, 128          # batch, seq, in_features, hidden
    x = jax.random.normal(kx, (B, S, D_IN), jnp.float32)
    params = init_params(kp, in_features=D_IN, hidden_features=D_HID)

    out = mlp_forward(x, params)
    jax.block_until_ready(out)

    ref = mlp_ref(x, params)
    assert out.shape == (B, S, D_IN)
    assert jnp.allclose(out, ref, atol=2e-5, rtol=2e-5)
    print("KERNEL_OK")
</pallas_src>

<mosaic_0001>
module attributes {stable_mosaic.version = 11 : i64} {
  func.func @mlp_kernel(%arg0: i32, %arg1: memref<16x32xf32, #tpu.memory_space<vmem>>, %arg2: memref<32x128xf32, #tpu.memory_space<vmem>>, %arg3: memref<1x128xf32, #tpu.memory_space<vmem>>, %arg4: memref<128x32xf32, #tpu.memory_space<vmem>>, %arg5: memref<1x32xf32, #tpu.memory_space<vmem>>, %arg6: memref<16x32xf32, #tpu.memory_space<vmem>>) attributes {dimension_semantics = [#tpu.dimension_semantics<parallel>], iteration_bounds = array<i64: 1>, scalar_prefetch = 0 : i64, scratch_operands = 0 : i64, tpu.core_type = #tpu.core_type<tc>, window_params = [{transform_indices = @transform_0, window_bounds = array<i64: 16, 32>}, {pipeline_mode = #tpu.pipeline_mode<synchronous>, transform_indices = @transform_1, window_bounds = array<i64: 32, 128>}, {pipeline_mode = #tpu.pipeline_mode<synchronous>, transform_indices = @transform_2, window_bounds = array<i64: 1, 128>}, {pipeline_mode = #tpu.pipeline_mode<synchronous>, transform_indices = @transform_3, window_bounds = array<i64: 128, 32>}, {pipeline_mode = #tpu.pipeline_mode<synchronous>, transform_indices = @transform_4, window_bounds = array<i64: 1, 32>}, {transform_indices = @transform_5, window_bounds = array<i64: 16, 32>}]} {
    %c0 = arith.constant 0 : index
    %c0_0 = arith.constant 0 : index
    %0 = vector.load %arg1[%c0, %c0_0] : memref<16x32xf32, #tpu.memory_space<vmem>>, vector<16x32xf32>
    %c0_1 = arith.constant 0 : index
    %c0_2 = arith.constant 0 : index
    %1 = vector.load %arg2[%c0_1, %c0_2] : memref<32x128xf32, #tpu.memory_space<vmem>>, vector<32x128xf32>
    %cst = arith.constant dense<0.000000e+00> : vector<16x128xf32>
    %2 = tpu.matmul %0, %1, %cst {dimension_numbers = #tpu.dot_dimension_numbers<[1], [0], [0], [1], [0, 0, 1, 1], [], []>} : vector<16x32xf32>, vector<32x128xf32>, vector<16x128xf32> -> vector<16x128xf32>
    %c0_3 = arith.constant 0 : index
    %c0_4 = arith.constant 0 : index
    %3 = vector.load %arg3[%c0_3, %c0_4] : memref<1x128xf32, #tpu.memory_space<vmem>>, vector<1x128xf32>
    %4 = vector.broadcast %3 : vector<1x128xf32> to vector<16x128xf32>
    %5 = arith.addf %2, %4 : vector<16x128xf32>
    %cst_5 = arith.constant 5.000000e-01 : f32
    %6 = vector.broadcast %cst_5 : f32 to vector<16x128xf32>
    %7 = arith.mulf %5, %6 : vector<16x128xf32>
    %cst_6 = arith.constant 0.707106769 : f32
    %8 = vector.broadcast %cst_6 : f32 to vector<16x128xf32>
    %9 = arith.mulf %5, %8 : vector<16x128xf32>
    %cst_7 = arith.constant 0.000000e+00 : f32
    %10 = vector.broadcast %cst_7 : f32 to vector<16x128xf32>
    %11 = arith.cmpf oge, %9, %10 : vector<16x128xf32>
    %cst_8 = arith.constant 1.000000e+00 : f32
    %cst_9 = arith.constant -1.000000e+00 : f32
    %12 = vector.broadcast %cst_8 : f32 to vector<16x128xf32>
    %13 = vector.broadcast %cst_9 : f32 to vector<16x128xf32>
    %14 = arith.select %11, %12, %13 : vector<16x128xi1>, vector<16x128xf32>
    %15 = math.absf %9 : vector<16x128xf32>
    %cst_10 = arith.constant 0.327591091 : f32
    %16 = vector.broadcast %cst_10 : f32 to vector<16x128xf32>
    %17 = arith.mulf %16, %15 : vector<16x128xf32>
    %cst_11 = arith.constant 1.000000e+00 : f32
    %18 = vector.broadcast %cst_11 : f32 to vector<16x128xf32>
    %19 = arith.addf %18, %17 : vector<16x128xf32>
    %cst_12 = arith.constant 1.000000e+00 : f32
    %20 = vector.broadcast %cst_12 : f32 to vector<16x128xf32>
    %21 = arith.divf %20, %19 : vector<16x128xf32>
    %cst_13 = arith.constant 1.06140542 : f32
    %22 = vector.broadcast %cst_13 : f32 to vector<16x128xf32>
    %23 = arith.mulf %22, %21 : vector<16x128xf32>
    %cst_14 = arith.constant -1.45315206 : f32
    %24 = vector.broadcast %cst_14 : f32 to vector<16x128xf32>
    %25 = arith.addf %23, %24 : vector<16x128xf32>
    %26 = arith.mulf %25, %21 : vector<16x128xf32>
    %cst_15 = arith.constant 1.42141378 : f32
    %27 = vector.broadcast %cst_15 : f32 to vector<16x128xf32>
    %28 = arith.addf %26, %27 : vector<16x128xf32>
    %29 = arith.mulf %28, %21 : vector<16x128xf32>
    %cst_16 = arith.constant -0.284496725 : f32
    %30 = vector.broadcast %cst_16 : f32 to vector<16x128xf32>
    %31 = arith.addf %29, %30 : vector<16x128xf32>
    %32 = arith.mulf %31, %21 : vector<16x128xf32>
    %cst_17 = arith.constant 0.254829586 : f32
    %33 = vector.broadcast %cst_17 : f32 to vector<16x128xf32>
    %34 = arith.addf %32, %33 : vector<16x128xf32>
    %35 = arith.mulf %34, %21 : vector<16x128xf32>
    %cst_18 = arith.constant 0.000000e+00 : f32
    %36 = vector.broadcast %cst_18 : f32 to vector<16x128xf32>
    %37 = arith.subf %36, %15 : vector<16x128xf32>
    %38 = arith.mulf %37, %15 : vector<16x128xf32>
    %39 = math.exp %38 : vector<16x128xf32>
    %40 = arith.mulf %35, %39 : vector<16x128xf32>
    %cst_19 = arith.constant 1.000000e+00 : f32
    %41 = vector.broadcast %cst_19 : f32 to vector<16x128xf32>
    %42 = arith.subf %41, %40 : vector<16x128xf32>
    %43 = arith.mulf %14, %42 : vector<16x128xf32>
    %cst_20 = arith.constant 1.000000e+00 : f32
    %44 = vector.broadcast %cst_20 : f32 to vector<16x128xf32>
    %45 = arith.addf %44, %43 : vector<16x128xf32>
    %46 = arith.mulf %7, %45 : vector<16x128xf32>
    %c0_21 = arith.constant 0 : index
    %c0_22 = arith.constant 0 : index
    %47 = vector.load %arg4[%c0_21, %c0_22] : memref<128x32xf32, #tpu.memory_space<vmem>>, vector<128x32xf32>
    %cst_23 = arith.constant dense<0.000000e+00> : vector<16x32xf32>
    %48 = tpu.matmul %46, %47, %cst_23 {dimension_numbers = #tpu.dot_dimension_numbers<[1], [0], [0], [1], [0, 0, 1, 1], [], []>} : vector<16x128xf32>, vector<128x32xf32>, vector<16x32xf32> -> vector<16x32xf32>
    %c0_24 = arith.constant 0 : index
    %c0_25 = arith.constant 0 : index
    %49 = vector.load %arg5[%c0_24, %c0_25] : memref<1x32xf32, #tpu.memory_space<vmem>>, vector<1x32xf32>
    %50 = vector.broadcast %49 : vector<1x32xf32> to vector<16x32xf32>
    %51 = arith.addf %48, %50 : vector<16x32xf32>
    %c0_26 = arith.constant 0 : index
    %c0_27 = arith.constant 0 : index
    %52 = vector.load %arg6[%c0_26, %c0_27] : memref<16x32xf32, #tpu.memory_space<vmem>>, vector<16x32xf32>
    tpu.vector_store %arg6[%c0_26, %c0_27], %51 {strides = array<i32>} : memref<16x32xf32, #tpu.memory_space<vmem>>, vector<16x32xf32>,
    return
  }
  func.func @transform_0(%arg0: i32) -> (i32, i32) {
    %c0_i32 = arith.constant 0 : i32
    %c0_i32_0 = arith.constant 0 : i32
    return %arg0, %c0_i32 : i32, i32
  }
  func.func @transform_1(%arg0: i32) -> (i32, i32) {
    %c0_i32 = arith.constant 0 : i32
    %c0_i32_0 = arith.constant 0 : i32
    %c0_i32_1 = arith.constant 0 : i32
    return %c0_i32, %c0_i32_0 : i32, i32
  }
  func.func @transform_2(%arg0: i32) -> (i32, i32) {
    %c0_i32 = arith.constant 0 : i32
    %c0_i32_0 = arith.constant 0 : i32
    %c0_i32_1 = arith.constant 0 : i32
    return %c0_i32, %c0_i32_0 : i32, i32
  }
  func.func @transform_3(%arg0: i32) -> (i32, i32) {
    %c0_i32 = arith.constant 0 : i32
    %c0_i32_0 = arith.constant 0 : i32
    %c0_i32_1 = arith.constant 0 : i32
    return %c0_i32, %c0_i32_0 : i32, i32
  }
  func.func @transform_4(%arg0: i32) -> (i32, i32) {
    %c0_i32 = arith.constant 0 : i32
    %c0_i32_0 = arith.constant 0 : i32
    %c0_i32_1 = arith.constant 0 : i32
    return %c0_i32, %c0_i32_0 : i32, i32
  }
  func.func @transform_5(%arg0: i32) -> (i32, i32) {
    %c0_i32 = arith.constant 0 : i32
    %c0_i32_0 = arith.constant 0 : i32
    return %arg0, %c0_i32 : i32, i32
  }
}

</mosaic_0001>

<bundles_post_ra>
// kernel: tpu_custom_call.1
= control target key start
LH: loop header
LB: loop body
LE: loop exit
PB: predicated region body
PF: predicated region fallthrough
CT: control target
= control target key end

     0   :  { %10 = vsyncpa [#allocation3], 0  ;;  %s758_s0 = inlined_call_operand.hbm [shape: f32[16,32], index: 0, kind: input, shape index: {}]   ;;  %s759_s1 = inlined_call_operand.hbm [shape: f32[32,128], index: 1, kind: input, shape index: {}]   ;;  %s760_s2 = inlined_call_operand.hbm [shape: f32[1,128], index: 2, kind: input, shape index: {}]   ;;  %s761_s3 = inlined_call_operand.hbm [shape: f32[128,32], index: 3, kind: input, shape index: {}]   ;;  %s762_s4 = inlined_call_operand.hbm [shape: f32[1,32], index: 4, kind: input, shape index: {}]   ;;  %s763_s5 = inlined_call_operand.hbm [shape: f32[16,32], index: 5, kind: output, shape index: {}]  }
   0x1   :  { %11 = vsyncpa [#allocation6], 0 }
   0x2   :  { %12 = vsyncpa [#allocation9], 0 }
   0x3   :  { %13 = vsyncpa [#allocation4], 0  ;;  %s624_s18 = smov [#allocation5]   ;;  %s625_s20 = smov [#allocation8]  }
   0x4   :  { %s31_s19 = sshll.u32 %s624_s18, 4  ;;  %s53_s21 = sshll.u32 %s625_s20, 4  ;;  %s32_s19 = int_to_ptr.vmem [resolvable:$true] %s31_s19  ;;  %s663_s21 = int_to_ptr.vmem [resolvable:$true] %s53_s21 }
   0x5   :  { %s484_s24 = scalar_lea.hbm %s759_s1, 512 }
   0x6   :  { %p485_p0 = scmp.ne.s32.totalorder %s759_s1, %s484_s24  ;;  %p488_p1 = scmp.lt.u32.totalorder %s484_s24, %s759_s1 }
   0x8   :  { %p490_p2 = pnand %p488_p1, %p485_p0 }
   0xa   :  { %493 = shalt.err (!%p490_p2)
}
   0xb   :  { %s494_s29 = scalar_lea.vmem %s32_s19, 512  ;;  %p499_p4 = scmp.lt.s32.totalorder %s32_s19, %s32_s19 }
   0xc   :  { %p495_p3 = scmp.ne.s32.totalorder %s32_s19, %s494_s29  ;;  %p500_p5 = scmp.lt.s32.totalorder %s494_s29, %s494_s29 }
   0xe   :  { %p501_p6 = por %p500_p5, %p499_p4 }
  0x10   :  { %p502_p7 = pnand %p501_p6, %p495_p3 }
  0x12   :  { %505 = shalt.err (!%p502_p7)
}
  0x13   :  { %s626_s30 = smov 128   ;;  %s627_s6 = smov 8  }
  0x14   :  { %37 = dma.hbm_to_vmem [thread:$0]  %s759_s1, 512, %s32_s19, [#allocation6], %s626_s30, %s626_s30, %s627_s6  }
  0x15   :  { %s506_s11 = scalar_lea.hbm %s761_s3, 2048 }
  0x16   :  { %p507_p8 = scmp.ne.s32.totalorder %s761_s3, %s506_s11  ;;  %p510_p9 = scmp.lt.u32.totalorder %s506_s11, %s761_s3 }
  0x18   :  { %p512_p10 = pnand %p510_p9, %p507_p8 }
  0x1a   :  { %515 = shalt.err (!%p512_p10)
}
  0x1b   :  { %s516_s16 = scalar_lea.vmem %s663_s21, 2048  ;;  %p521_p12 = scmp.lt.s32.totalorder %s663_s21, %s663_s21 }
  0x1c   :  { %p517_p11 = scmp.ne.s32.totalorder %s663_s21, %s516_s16  ;;  %p522_p13 = scmp.lt.s32.totalorder %s516_s16, %s516_s16 }
  0x1e   :  { %p523_p0 = por %p522_p13, %p521_p12 }
  0x20   :  { %p524_p1 = pnand %p523_p0, %p517_p11 }
  0x22   :  { %527 = shalt.err (!%p524_p1)
}
  0x23   :  { %59 = dma.hbm_to_vmem [thread:$0]  %s761_s3, 2048, %s663_s21, [#allocation9], %s626_s30, %s626_s30, %s627_s6  }
  0x24   :  { %s628_s18 = smov [#allocation2]   ;;  %s629_s20 = smov [#allocation7]  }
  0x25   :  { %s19_s19 = sshll.u32 %s628_s18, 4  ;;  %s44_s22 = sshll.u32 %s629_s20, 4  ;;  %s20_s19 = int_to_ptr.vmem [resolvable:$true] %s19_s19  ;;  %s45_s22 = int_to_ptr.vmem [resolvable:$true] %s44_s22 }
  0x26   :  { %s528_s25 = scalar_lea.hbm %s758_s0, 256 }
  0x27   :  { %p529_p2 = scmp.ne.s32.totalorder %s758_s0, %s528_s25  ;;  %p532_p3 = scmp.lt.u32.totalorder %s528_s25, %s758_s0 }
  0x29   :  { %p534_p4 = pnand %p532_p3, %p529_p2 }
  0x2b   :  { %537 = shalt.err (!%p534_p4)
}
  0x2c   :  { %s538_s3 = scalar_lea.vmem %s20_s19, 256  ;;  %p543_p6 = scmp.lt.s32.totalorder %s20_s19, %s20_s19 }
  0x2d   :  { %p539_p5 = scmp.ne.s32.totalorder %s20_s19, %s538_s3  ;;  %p544_p7 = scmp.lt.s32.totalorder %s538_s3, %s538_s3 }
  0x2f   :  { %p545_p8 = por %p544_p7, %p543_p6 }
  0x31   :  { %p546_p9 = pnand %p545_p8, %p539_p5 }
  0x33   :  { %549 = shalt.err (!%p546_p9)
}
  0x34   :  { %25 = dma.hbm_to_vmem [thread:$0]  %s758_s0, 256, %s20_s19, [#allocation3], %s626_s30, %s626_s30, %s627_s6  }
  0x35   :  { %s550_s10 = scalar_lea.hbm %s760_s2, 16 }
  0x36   :  { %p551_p10 = scmp.ne.s32.totalorder %s760_s2, %s550_s10  ;;  %p554_p11 = scmp.lt.u32.totalorder %s550_s10, %s760_s2 }
  0x38   :  { %p556_p12 = pnand %p554_p11, %p551_p10 }
  0x3a   :  { %559 = shalt.err (!%p556_p12)
}
  0x3b   :  { %s560_s15 = scalar_lea.vmem %s45_s22, 16  ;;  %s564_s16 = scalar_lea.vmem %s45_s22, 32 }
  0x3c   :  { %p561_p13 = scmp.ne.s32.totalorder %s45_s22, %s560_s15  ;;  %p565_p0 = scmp.lt.s32.totalorder %s45_s22, %s45_s22 }
  0x3d   :  { %p566_p1 = scmp.lt.s32.totalorder %s564_s16, %s560_s15 }
  0x3f   :  { %p567_p2 = por %p566_p1, %p565_p0 }
  0x41   :  { %p568_p3 = pnand %p567_p2, %p561_p13 }
  0x43   :  { %571 = shalt.err (!%p568_p3)
}
  0x44   :  { %47 = dma.hbm_to_vmem [thread:$0]  %s760_s2, 16, %s45_s22, [#allocation6]  }
  0x45   :  { %s630_s17 = smov [#allocation10]   ;;  %s572_s23 = scalar_lea.hbm %s762_s4, 16 }
  0x46   :  { %s66_s18 = sshll.u32 %s630_s17, 4  ;;  %p573_p4 = scmp.ne.s32.totalorder %s762_s4, %s572_s23  ;;  %s67_s18 = int_to_ptr.vmem [resolvable:$true] %s66_s18 }
  0x47   :  { %p576_p5 = scmp.lt.u32.totalorder %s572_s23, %s762_s4 }
  0x49   :  { %p578_p6 = pnand %p576_p5, %p573_p4 }
  0x4b   :  { %581 = shalt.err (!%p578_p6)
}
  0x4c   :  { %s582_s28 = scalar_lea.vmem %s67_s18, 16  ;;  %s586_s2 = scalar_lea.vmem %s67_s18, 32 }
  0x4d   :  { %p583_p7 = scmp.ne.s32.totalorder %s67_s18, %s582_s28  ;;  %p587_p8 = scmp.lt.s32.totalorder %s67_s18, %s67_s18 }
  0x4e   :  { %p588_p9 = scmp.lt.s32.totalorder %s586_s2, %s582_s28 }
  0x50   :  { %p589_p10 = por %p588_p9, %p587_p8 }
  0x52   :  { %p590_p11 = pnand %p589_p10, %p583_p7 }
  0x54   :  { %593 = shalt.err (!%p590_p11)
}
  0x55   :  { %69 = dma.hbm_to_vmem [thread:$0]  %s762_s4, 16, %s67_s18, [#allocation9]  }
  0x56   :  { %616 = dma.done.wait [#allocation3], 256  }
  0x57   :  { %617 = vsyncadd [#allocation3], 4294967040 }
  0x58   :  { %618 = dma.done.wait [#allocation6], 528  }
  0x59   :  { %619 = vsyncadd [#allocation6], 4294966768 }
  0x5a   :  { %620 = dma.done.wait [#allocation9], 2064  }
  0x5b   :  { %621 = vsyncadd [#allocation9], 4294965232  ;;  %vm98_vm0 = vcmask 261120   ;;  %v87_v0 = vld [vmem:[#allocation5] sm:$0xff]  ;;  %v88_v1 = vld [vmem:[#allocation5 + $0x8] sm:$0xff]  ;;  %s632_s4 = smov [#allocation11]  }
  0x5c   :  { %v89_v2 = vld [vmem:[#allocation5 + $0x10] sm:$0xff]  ;;  %v427_v3 = vpack.c.bf16 %v88_v1, %v87_v0  ;;  %v90_v4 = vld [vmem:[#allocation5 + $0x18] sm:$0xff]  ;;  %v234_v8 = vld [vmem:[#allocation8] sm:$0xff]  ;;  %s339_s3 = sshll.u32 %s632_s4, 4  ;;  %s340_s3 = int_to_ptr.vmem [resolvable:$true] %s339_s3 }
  0x5d   :  { %v85_v5 = vld [vmem:[#allocation2] sm:$0xff]  ;;  %v431_v6 = vpack.c.bf16 %v90_v4, %v89_v2  ;;  %v86_v7 = vld [vmem:[#allocation2 + $0x8] sm:$0xff]  ;;  %v238_v14 = vld [vmem:[#allocation8 + $0x20] sm:$0xff]  ;;  %s594_s21 = scalar_lea.vmem %s340_s3, 256  ;;  %p599_p13 = scmp.lt.s32.totalorder %s340_s3, %s340_s3 }
  0x5e   :  { %389 = vmatprep.mubr.msk.f32.mxu0 %vm98_vm0, %v85_v5  ;;  %428 = vmatprep.subr.bf16.mxu0 %v427_v3  ;;  %v235_v9 = vld [vmem:[#allocation8 + $0x8] sm:$0xff]  ;;  %v236_v10 = vld [vmem:[#allocation8 + $0x10] sm:$0xff]  ;;  %v237_v12 = vld [vmem:[#allocation8 + $0x18] sm:$0xff]  ;;  %p595_p12 = scmp.ne.s32.totalorder %s340_s3, %s594_s21  ;;  %p600_p0 = scmp.lt.s32.totalorder %s594_s21, %s594_s21 }
  0x5f   :  { %430 = vmatpush3.bf16.msra.mxu0 %v427_v3  ;;  %v435_v11 = vpack.c.bf16 %v235_v9, %v234_v8  ;;  %v439_v13 = vpack.c.bf16 %v237_v12, %v236_v10  ;;  %v239_v15 = vld [vmem:[#allocation8 + $0x28] sm:$0xff]  ;;  %v240_v17 = vld [vmem:[#allocation8 + $0x30] sm:$0xff]  ;;  %v241_v18 = vld [vmem:[#allocation8 + $0x38] sm:$0xff]  ;;  %v631_v12 = vmov -1.0  }
  0x60   :  { %432 = vmatprep.subr.bf16.mxu0 %v431_v6  ;;  %v443_v16 = vpack.c.bf16 %v239_v15, %v238_v14  ;;  %v447_v19 = vpack.c.bf16 %v241_v18, %v240_v17  ;;  %v242_v20 = vld [vmem:[#allocation8 + $0x40] sm:$0xff]  ;;  %v243_v21 = vld [vmem:[#allocation8 + $0x48] sm:$0xff]  ;;  %v244_v23 = vld [vmem:[#allocation8 + $0x50] sm:$0xff]  ;;  %p601_p1 = por %p600_p0, %p599_p13 }
  0x61   :  { %436 = vmatprep.subr.bf16.mxu1 %v435_v11  ;;  %v451_v22 = vpack.c.bf16 %v243_v21, %v242_v20  ;;  %v245_v24 = vld [vmem:[#allocation8 + $0x58] sm:$0xff]  ;;  %v246_v26 = vld [vmem:[#allocation8 + $0x60] sm:$0xff]  ;;  %v247_v27 = vld [vmem:[#allocation8 + $0x68] sm:$0xff] }
  0x62   :  { %438 = vmatpush3.bf16.msra.mxu1 %v435_v11  ;;  %v455_v25 = vpack.c.bf16 %v245_v24, %v244_v23  ;;  %v459_v28 = vpack.c.bf16 %v247_v27, %v246_v26  ;;  %v248_v29 = vld [vmem:[#allocation8 + $0x70] sm:$0xff]  ;;  %v249_v30 = vld [vmem:[#allocation8 + $0x78] sm:$0xff]  ;;  %v356_v24 = vld [vmem:[#allocation10] ss:$0 sm:$0xff]  ;;  %p602_p2 = pnand %p601_p1, %p595_p12 }
  0x63   :  { %434 = vmatpush3.bf16.msra.mxu0 %v431_v6  ;;  %440 = vmatprep.subr.bf16.mxu1 %v439_v13  ;;  %v463_v31 = vpack.c.bf16 %v249_v30, %v248_v29  ;;  %v353_v32 = vld [vmem:[#allocation7] ss:$0 sm:$0xff] }
  0x66   :  { %390 = vmatmul.mubr.msk.f32.vlgmr.msra.gmra.mrb[0].mxu0 %vm98_vm0, %v86_v7  ;;  %442 = vmatpush3.bf16.msra.mxu1 %v439_v13 }
  0x67   :  { %444 = vmatprep.subr.bf16.mxu1 %v443_v16 }
  0x6a   :  { %446 = vmatpush3.bf16.msra.mxu1 %v443_v16 }
  0x6b   :  { %448 = vmatprep.subr.bf16.mxu1 %v447_v19 }
  0x6e   :  { %450 = vmatpush3.bf16.msra.mxu1 %v447_v19 }
  0x6f   :  { %452 = vmatprep.subr.bf16.mxu1 %v451_v22 }
  0x72   :  { %454 = vmatpush3.bf16.msra.mxu1 %v451_v22 }
  0x73   :  { %456 = vmatprep.subr.bf16.mxu1 %v455_v25 }
  0x76   :  { %458 = vmatpush3.bf16.msra.mxu1 %v455_v25 }
  0x77   :  { %460 = vmatprep.subr.bf16.mxu1 %v459_v28 }
  0x7a   :  { %462 = vmatpush3.bf16.msra.mxu1 %v459_v28 }
  0x7b   :  { %464 = vmatprep.subr.bf16.mxu1 %v463_v31 }
  0x7e   :  { %466 = vmatpush3.bf16.msra.mxu1 %v463_v31 }
 0x139   :  { %v391_v33 = vpop.f32.mrb[0].mxu0 }
 0x13a   :  { %v177_v34 = vadd.f32 %v391_v33, %v353_v32  ;;  %v171_v35 = vpop.f32.mrb[1].mxu0 }
 0x13b   :  { %v172_v36 = vadd.f32 %v353_v32, %v171_v35 }
 0x13c   :  { %v183_v37 = vmul.f32 0.70710677, %v177_v34  ;;  %v181_v21 = vmul.f32 0.5, %v177_v34 }
 0x13d   :  { %v182_v38 = vmul.f32 0.70710677, %v172_v36  ;;  %v180_v19 = vmul.f32 0.5, %v172_v36 }
 0x13e   :  { %v189_v39 = vand.u32 2147483647, %v183_v37  ;;  %vm185_vm1 = vcmp.ge.f32.partialorder %v183_v37, 0.0 }
 0x13f   :  { %v188_v40 = vand.u32 2147483647, %v182_v38  ;;  %vm184_vm2 = vcmp.ge.f32.partialorder %v182_v38, 0.0  ;;  %v187_v13 = vsel %vm185_vm1, 1.0, %v631_v12 }
 0x140   :  { %v191_v41 = vmul.f32 0.3275911, %v189_v39  ;;  %v217_v45 = vsub.f32 0.0, %v189_v39  ;;  %v186_v15 = vsel %vm184_vm2, 1.0, %v631_v12 }
 0x141   :  { %v190_v42 = vmul.f32 0.3275911, %v188_v40  ;;  %v216_v46 = vsub.f32 0.0, %v188_v40 }
 0x142   :  { %v193_v43 = vadd.f32 1.0, %v191_v41  ;;  %v219_v48 = vmul.f32 %v217_v45, %v189_v39 }
 0x143   :  { %v192_v44 = vadd.f32 1.0, %v190_v42  ;;  %v218_v50 = vmul.f32 %v216_v46, %v188_v40 }
 0x144   :  { %476 = vrcp.f32 %v193_v43  ;;  %v222_v54 = vmul.f32 1.442695, %v219_v48 }
 0x145   :  { %478 = vrcp.f32 %v192_v44  ;;  %v220_v56 = vmul.f32 1.442695, %v218_v50 }
 0x146   :  { %480 = vpow2.f32 %v222_v54 }
 0x147   :  { %482 = vpow2.f32 %v220_v56 }
 0x14e   :  { %v477_v47 = vpop.eup %476 }
 0x14f   :  { %v479_v49 = vpop.eup %478  ;;  %v199_v51 = vmul.f32 1.0614054, %v477_v47 }
 0x150   :  { %v198_v52 = vmul.f32 1.0614054, %v479_v49  ;;  %v481_v6 = vpop.eup %480 }
 0x151   :  { %v201_v53 = vadd.f32 -1.4531521, %v199_v51  ;;  %v483_v8 = vpop.eup %482 }
 0x152   :  { %v200_v55 = vadd.f32 -1.4531521, %v198_v52 }
 0x153   :  { %v203_v57 = vmul.f32 %v477_v47, %v201_v53 }
 0x154   :  { %v202_v58 = vmul.f32 %v479_v49, %v200_v55 }
 0x155   :  { %v205_v59 = vadd.f32 1.4214138, %v203_v57 }
 0x156   :  { %v204_v60 = vadd.f32 1.4214138, %v202_v58 }
 0x157   :  { %v207_v61 = vmul.f32 %v477_v47, %v205_v59 }
 0x158   :  { %v206_v62 = vmul.f32 %v479_v49, %v204_v60 }
 0x159   :  { %v209_v63 = vadd.f32 -0.28449672, %v207_v61 }
 0x15a   :  { %v208_v0 = vadd.f32 -0.28449672, %v206_v62 }
 0x15b   :  { %v211_v1 = vmul.f32 %v477_v47, %v209_v63 }
 0x15c   :  { %v210_v2 = vmul.f32 %v479_v49, %v208_v0 }
 0x15d   :  { %v213_v3 = vadd.f32 0.2548296, %v211_v1 }
 0x15e   :  { %v212_v4 = vadd.f32 0.2548296, %v210_v2 }
 0x15f   :  { %v215_v5 = vmul.f32 %v477_v47, %v213_v3 }
 0x160   :  { %v214_v7 = vmul.f32 %v479_v49, %v212_v4 }
 0x161   :  { %v225_v9 = vmul.f32 %v481_v6, %v215_v5 }
 0x162   :  { %v224_v10 = vmul.f32 %v483_v8, %v214_v7 }
 0x163   :  { %v227_v11 = vsub.f32 1.0, %v225_v9 }
 0x164   :  { %v226_v14 = vsub.f32 1.0, %v224_v10 }
 0x165   :  { %v229_v16 = vmul.f32 %v227_v11, %v187_v13 }
 0x166   :  { %v228_v17 = vmul.f32 %v226_v14, %v186_v15 }
 0x167   :  { %v231_v18 = vadd.f32 1.0, %v229_v16 }
 0x168   :  { %v230_v20 = vadd.f32 1.0, %v228_v17 }
 0x169   :  { %v233_v23 = vmul.f32 %v231_v18, %v181_v21 }
 0x16a   :  { %v232_v22 = vmul.f32 %v230_v20, %v180_v19 }
 0x16c   :  { %424 = vmatprep.mubr.f32.mxu1 %v232_v22 }
 0x16d   :  { %425 = vmatmul.mubr.f32.vlgmr.msra.gmra.mrb[0].mxu1 %v233_v23 }
 0x240   :  { %v426_v25 = vpop.f32.mrb[0].mxu1 }
 0x241   :  { %v329_v26 = vadd.f32 %v426_v25, %v356_v24  ;;  %v323_v27 = vpop.f32.mrb[1].mxu1 }
 0x242   :  { %v324_v28 = vadd.f32 %v356_v24, %v323_v27 }
 0x243   :  { %333 = vst.msk [vmem:[#allocation11 + $0x8] sm:$0xff] %vm98_vm0, %v329_v26 }
 0x244   :  { %332 = vst.msk [vmem:[#allocation11] sm:$0xff] %vm98_vm0, %v324_v28 }
 0x245   :  { %605 = shalt.err (!%p602_p2)
}
 0x246   :  { %s606_s9 = scalar_lea.hbm %s763_s5, 256 }
 0x247   :  { %p607_p3 = scmp.ne.s32.totalorder %s763_s5, %s606_s9  ;;  %p610_p4 = scmp.lt.u32.totalorder %s606_s9, %s763_s5 }
 0x249   :  { %p612_p5 = pnand %p610_p4, %p607_p3 }
 0x24b   :  { %615 = shalt.err (!%p612_p5)
}
 0x24c   :  { %345 = dma.vmem_to_hbm [thread:$0]  %s340_s3, 256, %s763_s5, [#allocation4], %s626_s30, %s626_s30, %s627_s6  }
 0x24d   :  { %622 = dma.done.wait [#allocation4], 256  }
 0x24e   :  { %623 = vsyncadd [#allocation4], 4294967040 }
 0x24f   :  { %349 = vsyncpa [#allocation3], 1 }
 0x250   :  { %350 = vsyncpa [#allocation6], 1 }
 0x251   :  { %351 = vsyncpa [#allocation9], 1 }
 0x252   :  { %352 = vsyncpa [#allocation4], 1 }

</bundles_post_ra>
